<compile_context>
chip_gen: v6e
topology: v6e:2x2x1
jax: 0.10.0
libtpu: 0.0.40
codegen_flags: <defaults>
</compile_context>

<pallas_src>
import functools

import jax
import jax.numpy as jnp
from jax.experimental import pallas as pl
from jax.experimental.pallas import tpu as pltpu

HEAD_SUB = 8  # fused-head sublane count: action logits [0:A), value at row A


def _round_up(n, m):
    return ((n + m - 1) // m) * m


def actor_critic_kernel(xt_ref, w1t_ref, b1t_ref, wht_ref, bht_ref, out_ref, *,
                        action_size):
    """Transposed forward: everything is (feature, batch_tile).

    xt_ref : (state_pad, TM)      input rows, transposed
    w1t_ref: (hid_pad, state_pad) affine1 weight, transposed
    b1t_ref: (hid_pad, 1)         affine1 bias (f32)
    wht_ref: (HEAD_SUB, hid_pad)  fused action+value head weight, transposed
    bht_ref: (HEAD_SUB, 1)        fused head bias (f32)
    out_ref: (HEAD_SUB, TM)       rows [0:A) = probs, row A = value, rest = 0
    """
    # Hidden layer: ReLU(W1^T @ x^T + b1). MXU in input dtype, f32 accumulate.
    h = jnp.dot(w1t_ref[...], xt_ref[...], preferred_element_type=jnp.float32)
    h = jnp.maximum(h + b1t_ref[...], 0.0)

    # Fused heads: one (8, hid) @ (hid, TM) MXU pass -> logits + value.
    z = jnp.dot(wht_ref[...], h.astype(wht_ref.dtype),
                preferred_element_type=jnp.float32) + bht_ref[...]

    row = jax.lax.broadcasted_iota(jnp.int32, z.shape, dimension=0)
    is_logit = row < action_size

    # Numerically stable softmax over the logit sublanes only (f32, v5e-safe).
    neg_big = jnp.finfo(jnp.float32).min
    m = jnp.max(jnp.where(is_logit, z, neg_big), axis=0, keepdims=True)
    e = jnp.where(is_logit, jnp.exp(z - m), 0.0)
    inv_denom = pl.reciprocal(jnp.sum(e, axis=0, keepdims=True))  # exact
    probs = e * inv_denom

    # Row A carries the raw value; padding rows (A+1..7) fall back to probs=0.
    out_ref[...] = jnp.where(row == action_size, z, probs).astype(out_ref.dtype)


def prepare_params(w1, b1, wa, ba, wv, bv, *, mxu_dtype=jnp.bfloat16):
    """One-time (per parameter update) layout plumbing: pad, fuse, transpose."""
    state_size, hidden = w1.shape
    action_size = wa.shape[1]
    assert 1 <= action_size <= HEAD_SUB - 1

    state_pad = _round_up(state_size, 8)
    hid_pad = _round_up(hidden, 8)

    w1t = jnp.zeros((hid_pad, state_pad), jnp.float32)
    w1t = w1t.at[:hidden, :state_size].set(w1.T)
    b1t = jnp.zeros((hid_pad, 1), jnp.float32).at[:hidden, 0].set(b1.reshape(-1))

    wht = jnp.zeros((HEAD_SUB, hid_pad), jnp.float32)
    wht = wht.at[:action_size, :hidden].set(wa.T)
    wht = wht.at[action_size, :hidden].set(wv.reshape(-1))
    bht = jnp.zeros((HEAD_SUB, 1), jnp.float32)
    bht = bht.at[:action_size, 0].set(ba.reshape(-1))
    bht = bht.at[action_size, 0].set(bv.reshape(-1)[0])

    return dict(
        w1t=w1t.astype(mxu_dtype), b1t=b1t,
        wht=wht.astype(mxu_dtype), bht=bht,
        state_size=state_size, state_pad=state_pad, hid_pad=hid_pad,
        action_size=action_size, mxu_dtype=mxu_dtype)


def actor_critic_forward(x, params, *, tm=2048):
    """Forward pass of ActorCritic. Returns (action_probs, state_values)."""
    batch, state_size = x.shape
    assert state_size == params["state_size"]
    action_size = params["action_size"]
    state_pad = params["state_pad"]
    hid_pad = params["hid_pad"]
    mxu_dtype = params["mxu_dtype"]

    # Batch is the lane axis: tile it in multiples of 128, up to `tm` rows.
    tm_eff = min(_round_up(tm, 128), _round_up(max(batch, 1), 128))
    padded_batch = _round_up(batch, tm_eff)

    # Transposed, zero-padded input: (state_pad, padded_batch), bf16 for MXU.
    xt = jnp.zeros((state_pad, padded_batch), mxu_dtype)
    xt = xt.at[:state_size, :batch].set(x.T.astype(mxu_dtype))

    grid = (padded_batch // tm_eff,)

    out = pl.pallas_call(
        functools.partial(actor_critic_kernel, action_size=action_size),
        out_shape=jax.ShapeDtypeStruct((HEAD_SUB, padded_batch), jnp.float32),
        grid=grid,
        in_specs=[
            pl.BlockSpec((state_pad, tm_eff), lambda i: (0, i)),   # x^T tiles
            pl.BlockSpec((hid_pad, state_pad), lambda i: (0, 0)),  # resident
            pl.BlockSpec((hid_pad, 1), lambda i: (0, 0)),
            pl.BlockSpec((HEAD_SUB, hid_pad), lambda i: (0, 0)),
            pl.BlockSpec((HEAD_SUB, 1), lambda i: (0, 0)),
        ],
        out_specs=pl.BlockSpec((HEAD_SUB, tm_eff), lambda i: (0, i)),
        compiler_params=pltpu.CompilerParams(
            dimension_semantics=("parallel",),
            vmem_limit_bytes=32 * 1024 * 1024),
    )(xt, params["w1t"], params["b1t"], params["wht"], params["bht"])

    probs = out[:action_size, :batch].T                       # (batch, A)
    values = out[action_size:action_size + 1, :batch].T       # (batch, 1)
    return probs, values


def init_params(key, state_size, hidden_size, action_size):
    """PyTorch-Linear-style init: U(-1/sqrt(fan_in), 1/sqrt(fan_in))."""
    ks = jax.random.split(key, 6)

    def lin(kw, kb, fan_in, fan_out):
        bound = 1.0 / jnp.sqrt(jnp.float32(fan_in))
        w = jax.random.uniform(kw, (fan_in, fan_out), jnp.float32, -bound, bound)
        b = jax.random.uniform(kb, (1, fan_out), jnp.float32, -bound, bound)
        return w, b

    w1, b1 = lin(ks[0], ks[1], state_size, hidden_size)
    wa, ba = lin(ks[2], ks[3], hidden_size, action_size)
    wv, bv = lin(ks[4], ks[5], hidden_size, 1)
    return w1, b1, wa, ba, wv, bv


# TODO(synk): select_action / compute_returns / update / train are host-side
# RL control flow (sampling, optimizer, episode loop) and are not part of the
# forward pass; they are intentionally not translated to Pallas.

if __name__ == "__main__":
    # CartPole-like shapes from the module: state=4, hidden=64, actions=2.
    batch, state_size, hidden_size, action_size = 2, 4, 64, 2

    key = jax.random.PRNGKey(0)
    kx, kp, kb = jax.random.split(key, 3)
    x = jax.random.normal(kx, (batch, state_size), jnp.float32)
    raw = init_params(kp, state_size, hidden_size, action_size)
    params = prepare_params(*raw)

    probs, values = actor_critic_forward(x, params)
    jax.block_until_ready((probs, values))

    # Pure-JAX reference of the PyTorch forward, mirroring the kernel's
    # intentional bf16 weight/activation quantization (f32 accumulation).
    w1, b1, wa, ba, wv, bv = raw
    q = lambda a: a.astype(jnp.bfloat16).astype(jnp.float32)

    def ref_fwd(xr):
        h = jnp.maximum(q(xr) @ q(w1) + b1, 0.0)
        hq = q(h)
        return jax.nn.softmax(hq @ q(wa) + ba, axis=-1), hq @ q(wv) + bv

    probs_ref, values_ref = ref_fwd(x)
    assert probs.shape == (batch, action_size) and values.shape == (batch, 1)
    assert jnp.allclose(probs, probs_ref, atol=2e-3)
    assert jnp.allclose(values, values_ref, atol=2e-3)
    # Exact reciprocal: probability rows sum to 1 at f32 precision.
    assert jnp.allclose(jnp.sum(probs, axis=-1), 1.0, atol=1e-5)

    # Multi-tile grid + batch-padding path (3 grid steps at TM=2048).
    big_batch = 4100
    xb = jax.random.normal(kb, (big_batch, state_size), jnp.float32)
    pb, vb = actor_critic_forward(xb, params, tm=2048)
    jax.block_until_ready((pb, vb))
    pr, vr = ref_fwd(xb)
    assert pb.shape == (big_batch, action_size) and vb.shape == (big_batch, 1)
    assert jnp.allclose(pb, pr, atol=2e-3)
    assert jnp.allclose(vb, vr, atol=2e-3)

    print("KERNEL_OK")
</pallas_src>

<mosaic_0001>
module attributes {stable_mosaic.version = 11 : i64} {
  func.func @actor_critic_kernel(%arg0: i32, %arg1: memref<8x128xbf16, #tpu.memory_space<vmem>>, %arg2: memref<64x8xbf16, #tpu.memory_space<vmem>>, %arg3: memref<64x1xf32, #tpu.memory_space<vmem>>, %arg4: memref<8x64xbf16, #tpu.memory_space<vmem>>, %arg5: memref<8x1xf32, #tpu.memory_space<vmem>>, %arg6: memref<8x128xf32, #tpu.memory_space<vmem>>) attributes {dimension_semantics = [#tpu.dimension_semantics<parallel>], iteration_bounds = array<i64: 1>, scalar_prefetch = 0 : i64, scratch_operands = 0 : i64, tpu.core_type = #tpu.core_type<tc>, window_params = [{transform_indices = @transform_0, window_bounds = array<i64: 8, 128>}, {pipeline_mode = #tpu.pipeline_mode<synchronous>, transform_indices = @transform_1, window_bounds = array<i64: 64, 8>}, {pipeline_mode = #tpu.pipeline_mode<synchronous>, transform_indices = @transform_2, window_bounds = array<i64: 64, 1>}, {pipeline_mode = #tpu.pipeline_mode<synchronous>, transform_indices = @transform_3, window_bounds = array<i64: 8, 64>}, {pipeline_mode = #tpu.pipeline_mode<synchronous>, transform_indices = @transform_4, window_bounds = array<i64: 8, 1>}, {transform_indices = @transform_5, window_bounds = array<i64: 8, 128>}]} {
    %c0 = arith.constant 0 : index
    %c0_0 = arith.constant 0 : index
    %0 = vector.load %arg2[%c0, %c0_0] : memref<64x8xbf16, #tpu.memory_space<vmem>>, vector<64x8xbf16>
    %c0_1 = arith.constant 0 : index
    %c0_2 = arith.constant 0 : index
    %1 = vector.load %arg1[%c0_1, %c0_2] : memref<8x128xbf16, #tpu.memory_space<vmem>>, vector<8x128xbf16>
    %cst = arith.constant dense<0.000000e+00> : vector<64x128xf32>
    %2 = tpu.matmul %0, %1, %cst {dimension_numbers = #tpu.dot_dimension_numbers<[1], [0], [0], [1], [0, 0, 1, 1], [], []>} : vector<64x8xbf16>, vector<8x128xbf16>, vector<64x128xf32> -> vector<64x128xf32>
    %c0_3 = arith.constant 0 : index
    %c0_4 = arith.constant 0 : index
    %3 = vector.load %arg3[%c0_3, %c0_4] : memref<64x1xf32, #tpu.memory_space<vmem>>, vector<64x1xf32>
    %4 = vector.broadcast %3 : vector<64x1xf32> to vector<64x128xf32>
    %5 = arith.addf %2, %4 : vector<64x128xf32>
    %cst_5 = arith.constant 0.000000e+00 : f32
    %6 = vector.broadcast %cst_5 : f32 to vector<64x128xf32>
    %7 = arith.maximumf %5, %6 : vector<64x128xf32>
    %c0_6 = arith.constant 0 : index
    %c0_7 = arith.constant 0 : index
    %8 = vector.load %arg4[%c0_6, %c0_7] : memref<8x64xbf16, #tpu.memory_space<vmem>>, vector<8x64xbf16>
    %9 = arith.truncf %7 : vector<64x128xf32> to vector<64x128xbf16>
    %cst_8 = arith.constant dense<0.000000e+00> : vector<8x128xf32>
    %10 = tpu.matmul %8, %9, %cst_8 {dimension_numbers = #tpu.dot_dimension_numbers<[1], [0], [0], [1], [0, 0, 1, 1], [], []>} : vector<8x64xbf16>, vector<64x128xbf16>, vector<8x128xf32> -> vector<8x128xf32>
    %c0_9 = arith.constant 0 : index
    %c0_10 = arith.constant 0 : index
    %11 = vector.load %arg5[%c0_9, %c0_10] : memref<8x1xf32, #tpu.memory_space<vmem>>, vector<8x1xf32>
    %12 = vector.broadcast %11 : vector<8x1xf32> to vector<8x128xf32>
    %13 = arith.addf %10, %12 : vector<8x128xf32>
    %14 = tpu.iota {dimensions = array<i32: 0>} : vector<8x128xi32>
    %c2_i32 = arith.constant 2 : i32
    %15 = vector.broadcast %c2_i32 : i32 to vector<8x128xi32>
    %16 = arith.cmpi slt, %14, %15 : vector<8x128xi32>
    %cst_11 = arith.constant -3.40282347E+38 : f32
    %17 = vector.broadcast %cst_11 : f32 to vector<8x128xf32>
    %18 = arith.select %16, %13, %17 : vector<8x128xi1>, vector<8x128xf32>
    %cst_12 = arith.constant dense<0xFF800000> : vector<128xf32>
    %19 = vector.multi_reduction <maximumf>, %18, %cst_12 [0] : vector<8x128xf32> to vector<128xf32>
    %20 = vector.shape_cast %19 : vector<128xf32> to vector<1x128xf32>
    %21 = vector.broadcast %20 : vector<1x128xf32> to vector<8x128xf32>
    %22 = arith.subf %13, %21 : vector<8x128xf32>
    %23 = math.exp %22 : vector<8x128xf32>
    %cst_13 = arith.constant 0.000000e+00 : f32
    %24 = vector.broadcast %cst_13 : f32 to vector<8x128xf32>
    %25 = arith.select %16, %23, %24 : vector<8x128xi1>, vector<8x128xf32>
    %cst_14 = arith.constant dense<0.000000e+00> : vector<128xf32>
    %26 = vector.multi_reduction <add>, %25, %cst_14 [0] : vector<8x128xf32> to vector<128xf32>
    %27 = vector.shape_cast %26 : vector<128xf32> to vector<1x128xf32>
    %28 = tpu.reciprocal %27 : vector<1x128xf32> -> vector<1x128xf32>
    %29 = vector.broadcast %28 : vector<1x128xf32> to vector<8x128xf32>
    %30 = arith.mulf %25, %29 : vector<8x128xf32>
    %c2_i32_15 = arith.constant 2 : i32
    %31 = vector.broadcast %c2_i32_15 : i32 to vector<8x128xi32>
    %32 = arith.cmpi eq, %14, %31 : vector<8x128xi32>
    %33 = arith.select %32, %13, %30 : vector<8x128xi1>, vector<8x128xf32>
    %c0_16 = arith.constant 0 : index
    %c0_17 = arith.constant 0 : index
    %34 = vector.load %arg6[%c0_16, %c0_17] : memref<8x128xf32, #tpu.memory_space<vmem>>, vector<8x128xf32>
    tpu.vector_store %arg6[%c0_16, %c0_17], %33 {strides = array<i32>} : memref<8x128xf32, #tpu.memory_space<vmem>>, vector<8x128xf32>,
    return
  }
  func.func @transform_0(%arg0: i32) -> (i32, i32) {
    %c0_i32 = arith.constant 0 : i32
    %c0_i32_0 = arith.constant 0 : i32
    return %c0_i32, %arg0 : i32, i32
  }
  func.func @transform_1(%arg0: i32) -> (i32, i32) {
    %c0_i32 = arith.constant 0 : i32
    %c0_i32_0 = arith.constant 0 : i32
    %c0_i32_1 = arith.constant 0 : i32
    return %c0_i32, %c0_i32_0 : i32, i32
  }
  func.func @transform_2(%arg0: i32) -> (i32, i32) {
    %c0_i32 = arith.constant 0 : i32
    %c0_i32_0 = arith.constant 0 : i32
    %c0_i32_1 = arith.constant 0 : i32
    return %c0_i32, %c0_i32_0 : i32, i32
  }
  func.func @transform_3(%arg0: i32) -> (i32, i32) {
    %c0_i32 = arith.constant 0 : i32
    %c0_i32_0 = arith.constant 0 : i32
    %c0_i32_1 = arith.constant 0 : i32
    return %c0_i32, %c0_i32_0 : i32, i32
  }
  func.func @transform_4(%arg0: i32) -> (i32, i32) {
    %c0_i32 = arith.constant 0 : i32
    %c0_i32_0 = arith.constant 0 : i32
    %c0_i32_1 = arith.constant 0 : i32
    return %c0_i32, %c0_i32_0 : i32, i32
  }
  func.func @transform_5(%arg0: i32) -> (i32, i32) {
    %c0_i32 = arith.constant 0 : i32
    %c0_i32_0 = arith.constant 0 : i32
    return %c0_i32, %arg0 : i32, i32
  }
}

</mosaic_0001>

<bundles_post_ra>
// kernel: tpu_custom_call.1
= control target key start
LH: loop header
LB: loop body
LE: loop exit
PB: predicated region body
PF: predicated region fallthrough
CT: control target
= control target key end

     0   :  { %vm112_vm0 = vcmask 1043456   ;;  %vm99_vm1 = vcmask 64512   ;;  %v361_v5 = vmov 0   ;;  %s449_s0 = inlined_call_operand.vmem [shape: bf16[8,128], index: 0, kind: input, shape index: {}]   ;;  %s450_s1 = inlined_call_operand.vmem [shape: bf16[64,8], index: 1, kind: input, shape index: {}]   ;;  %s451_s2 = inlined_call_operand.vmem [shape: f32[64,1], index: 2, kind: input, shape index: {}]   ;;  %s452_s3 = inlined_call_operand.vmem [shape: bf16[8,64], index: 3, kind: input, shape index: {}]   ;;  %s453_s4 = inlined_call_operand.vmem [shape: f32[8,1], index: 4, kind: input, shape index: {}]   ;;  %s454_s5 = inlined_call_operand.hbm [shape: f32[8,128], index: 5, kind: output, shape index: {}]  }
   0x1   :  { %v30_v0 = vld [vmem:[%s449_s0] sm:$0xf]  ;;  %v332_v3 = vld [vmem:[%s450_s1 + $0x8] sm:$0xff]   ;;  %v333_v4 = vld [vmem:[%s450_s1 + $0x10] sm:$0xff]   ;;  %329 = vset.pattern.permute.xlu0 %v361_v5  ;;  %330 = vset.pattern.permute.xlu1 %v361_v5 }
   0x2   :  { %v331_v1 = vld [vmem:[%s450_s1] sm:$0xff]   ;;  %324 = vmatprep.subr.msk.bf16.mxu0 %vm112_vm0, %v30_v0  ;;  %v114_v2 = vsel %vm112_vm0, %v30_v0, 0  ;;  %v37_v6 = vld [vmem:[%s451_s2 + $0x30] sm:$0xff]  ;;  %v38_v8 = vld [vmem:[%s451_s2 + $0x38] sm:$0xff] }
   0x3   :  { %303 = vmatpush3.bf16.msra.mxu0 %v114_v2  ;;  %304 = vmatprep.mubr.msk.bf16.mxu0 %vm99_vm1, %v331_v1  ;;  %v35_v7 = vld [vmem:[%s451_s2 + $0x20] sm:$0xff]  ;;  %v36_v9 = vld [vmem:[%s451_s2 + $0x28] sm:$0xff] }
   0x4   :  { %71 = vperm.xlu0 %329, %v37_v6   ;;  %61 = vperm.xlu1 %330, %v35_v7  }
   0x6   :  { %305 = vmatmul.mubr.msk.bf16.vlgmr.msra.gmra.mxu0 %vm99_vm1, %v332_v3 }
   0x7   :  { %308 = vmatprep.mubr.msk.bf16.mxu0 %vm99_vm1, %v333_v4 }
   0x8   :  { %10 = vsyncpa [#allocation3], 0  ;;  %v334_v10 = vld [vmem:[%s450_s1 + $0x18] sm:$0xff]   ;;  %76 = vperm.xlu0 %329, %v38_v8   ;;  %66 = vperm.xlu1 %330, %v36_v9   ;;  %v33_v11 = vld [vmem:[%s451_s2 + $0x10] sm:$0xff]  ;;  %v362_v16 = vmov 0.0   ;;  %vm363_vm2 = vmmov 0   ;;  %v244_v54 = vlaneseq }
   0x9   :  { %v34_v12 = vld [vmem:[%s451_s2 + $0x18] sm:$0xff]  ;;  %v31_v13 = vld [vmem:[%s451_s2] sm:$0xff]  ;;  %v32_v14 = vld [vmem:[%s451_s2 + $0x8] sm:$0xff]  ;;  %312 = vmatprep.subr.bf16.mxu1 %v362_v16  ;;  %320 = vmatprep.mubr.msk.bf16.mxu1 %vm363_vm2, %v362_v16  ;;  %vm200_vm3 = vcmask 523264  }
   0xa   :  { %v194_v15 = vld [vmem:[%s453_s4] sm:$0xff]  ;;  %v245_v55 = vshrl.u32 %v244_v54, 7 }
   0xb   :  { %v189_v53 = vld [vmem:[%s452_s3] sm:$0xf]  ;;  %s364_s3 = smov [#allocation2]  }
   0xc   :  { %51 = vperm.xlu0 %329, %v33_v11   ;;  %56 = vperm.xlu1 %330, %v34_v12   ;;  %vm246_vm4 = vcmp.lt.s32.totalorder %v245_v55, 2  ;;  %s275_s19 = sshll.u32 %s364_s3, 4  ;;  %vm266_vm5 = vcmp.eq.s32.totalorder %v245_v55, 2  ;;  %s276_s19 = int_to_ptr.vmem [resolvable:$true] %s275_s19 }
   0xd   :  { %s339_s20 = scalar_lea.vmem %s276_s19, 128  ;;  %p344_p1 = scmp.lt.s32.totalorder %s276_s19, %s276_s19 }
   0xe   :  { %309 = vmatmul.mubr.msk.bf16.gmra.mxu0 %vm99_vm1, %v334_v10  ;;  %p340_p0 = scmp.ne.s32.totalorder %s276_s19, %s339_s20  ;;  %p345_p2 = scmp.lt.s32.totalorder %s339_s20, %s339_s20 }
  0x10   :  { %41 = vperm.xlu0 %329, %v31_v13   ;;  %46 = vperm.xlu1 %330, %v32_v14   ;;  %p346_p3 = por %p345_p2, %p344_p1 }
  0x12   :  { %p347_p4 = pnand %p346_p3, %p340_p0 }
  0x14   :  { %197 = vperm.xlu0 %329, %v194_v15  }
  0x7f   :  { %v62_v17 = vpop.permute.xlu1 %61  ;;  %v72_v19 = vpop.permute.xlu0 %71 }
  0x83   :  { %v67_v22 = vpop.permute.xlu1 %66  ;;  %v77_v24 = vpop.permute.xlu0 %76 }
  0x87   :  { %v57_v28 = vpop.permute.xlu1 %56  ;;  %v52_v31 = vpop.permute.xlu0 %51 }
  0x8b   :  { %v47_v40 = vpop.permute.xlu1 %46  ;;  %v42_v43 = vpop.permute.xlu0 %41 }
  0x8f   :  { %v198_v56 = vpop.permute.xlu0 %197 }
  0xc6   :  { %v306_v18 = vpop.f32.mrf.mxu0 }
  0xc7   :  { %v159_v41 = vadd.f32 %v306_v18, %v52_v31 }
  0xc8   :  { %v150_v20 = vpop.f32.mrf.mxu0 }
  0xc9   :  { %v183_v47 = vmax.f32 %v159_v41, 0.0  ;;  %v151_v48 = vadd.f32 %v150_v20, %v42_v43 }
  0xca   :  { %v307_v21 = vpop.f32.mrf.mxu0 }
  0xcb   :  { %v162_v37 = vadd.f32 %v307_v21, %v57_v28  ;;  %v181_v51 = vmax.f32 %v151_v48, 0.0 }
  0xcc   :  { %v153_v23 = vpop.f32.mrf.mxu0 }
  0xcd   :  { %v184_v44 = vmax.f32 %v162_v37, 0.0  ;;  %v154_v45 = vadd.f32 %v153_v23, %v47_v40 }
  0xce   :  { %v310_v25 = vpop.f32.mrf.mxu0 }
  0xcf   :  { %v175_v27 = vadd.f32 %v310_v25, %v72_v19  ;;  %v191_v49 = vpack.c.bf16 %v184_v44, %v183_v47  ;;  %v182_v50 = vmax.f32 %v154_v45, 0.0 }
  0xd0   :  { %v166_v26 = vpop.f32.mrf.mxu0 }
  0xd1   :  { %v187_v33 = vmax.f32 %v175_v27, 0.0  ;;  %v167_v34 = vadd.f32 %v166_v26, %v62_v17  ;;  %v190_v52 = vpack.c.bf16 %v182_v50, %v181_v51 }
  0xd2   :  { %v311_v29 = vpop.f32.mrf.mxu0 }
  0xd3   :  { %v178_v30 = vadd.f32 %v311_v29, %v77_v24  ;;  %v185_v42 = vmax.f32 %v167_v34, 0.0 }
  0xd4   :  { %v169_v32 = vpop.f32.mrf.mxu0 }
  0xd5   :  { %v188_v35 = vmax.f32 %v178_v30, 0.0  ;;  %v170_v36 = vadd.f32 %v169_v32, %v67_v22 }
  0xd7   :  { %v186_v38 = vmax.f32 %v170_v36, 0.0  ;;  %v193_v39 = vpack.c.bf16 %v188_v35, %v187_v33 }
  0xd9   :  { %313 = vmatpush3.bf16.msra.mxu1 %v193_v39  ;;  %v192_v46 = vpack.c.bf16 %v186_v38, %v185_v42 }
  0xda   :  { %314 = vmatprep.subr.bf16.mxu1 %v362_v16 }
  0xdd   :  { %315 = vmatpush3.bf16.msra.mxu1 %v192_v46 }
  0xde   :  { %316 = vmatprep.subr.bf16.mxu1 %v362_v16 }
  0xe1   :  { %317 = vmatpush3.bf16.msra.mxu1 %v191_v49 }
  0xe2   :  { %318 = vmatprep.subr.bf16.mxu1 %v362_v16 }
  0xe5   :  { %319 = vmatpush3.bf16.msra.mxu1 %v190_v52 }
  0xe8   :  { %321 = vmatmul.mubr.msk.bf16.vlgmr.msra.gmra.mxu1 %vm200_vm3, %v189_v53 }
 0x1a8   :  { %v238_v57 = vpop.f32.mrf.mxu1 }
 0x1a9   :  { %v239_v58 = vadd.f32 %v238_v57, %v198_v56 }
 0x1aa   :  { %v322_v59 = vpop.f32.mrf.mxu1 }
 0x1ab   :  { %v247_v60 = vsel %vm246_vm4, %v239_v58, -3.4028235e+38 }
 0x1ac   :  { %v248_v61 = vrot.slane %v247_v60, 4  ;;  %v241_v62 = vpop.f32.mrf.mxu1 }
 0x1ae   :  { %v249_v63 = vmax.f32 %v247_v60, %v248_v61  ;;  %v323_v0 = vpop.f32.mrf.mxu1 }
 0x1b0   :  { %v250_v1 = vrot.slane %v249_v63, 2 }
 0x1b2   :  { %v251_v2 = vmax.f32 %v249_v63, %v250_v1 }
 0x1b4   :  { %v252_v3 = vrot.slane %v251_v2, 1 }
 0x1b6   :  { %v253_v4 = vmax.f32 %v251_v2, %v252_v3 }
 0x1b8   :  { %v254_v5 = vsub.f32 %v239_v58, %v253_v4 }
 0x1ba   :  { %v255_v6 = vmul.f32 1.442695, %v254_v5 }
 0x1bc   :  { %335 = vpow2.f32 %v255_v6 }
 0x1c9   :  { %v336_v7 = vpop.eup %335 }
 0x1ca   :  { %v257_v8 = vsel %vm246_vm4, %v336_v7, 0.0 }
 0x1cb   :  { %v258_v9 = vrot.slane %v257_v8, 4 }
 0x1cd   :  { %v259_v10 = vadd.f32 %v258_v9, %v257_v8 }
 0x1cf   :  { %v260_v11 = vrot.slane %v259_v10, 2 }
 0x1d1   :  { %v261_v12 = vadd.f32 %v260_v11, %v259_v10 }
 0x1d3   :  { %v262_v13 = vrot.slane %v261_v12, 1 }
 0x1d5   :  { %v263_v14 = vadd.f32 %v262_v13, %v261_v12 }
 0x1d7   :  { %337 = vrcp.f32 %v263_v14 }
 0x1e4   :  { %v338_v15 = vpop.eup %337 }
 0x1e5   :  { %v265_v16 = vmul.f32 %v338_v15, %v257_v8 }
 0x1e7   :  { %v267_v17 = vsel %vm266_vm5, %v239_v58, %v265_v16 }
 0x1e8   :  { %268 = vst [vmem:[#allocation2] sm:$0xff] %v267_v17 }
 0x1e9   :  { %350 = shalt.err (!%p347_p4)
}
 0x1ea   :  { %278 = dma.vmem_to_hbm [thread:$0]  %s276_s19, 128, %s454_s5, [#allocation3]  }
 0x1eb   :  { %359 = dma.done.wait [#allocation3], 128  }
 0x1ec   :  { %360 = vsyncadd [#allocation3], 4294967168 }
 0x1ed   :  { %282 = vsyncpa [#allocation3], 1 }

</bundles_post_ra>
